<compile_context>
chip_gen: v7x
topology: tpu7x:2x2x1
jax: 0.10.0
libtpu: 0.0.40
codegen_flags: <defaults>
</compile_context>

<pallas_src>
import jax
import jax.numpy as jnp
from jax.experimental import pallas as pl
from jax.experimental.pallas import tpu as pltpu

# ---- synthetic "flat_args" configuration ----
W_BITS = 4          # weight fake-quant bits (sym, per-out-channel)
A_BITS = 4          # activation fake-quant bits (sym, per-token, groupsize=-1)
# TODO(synk): lwc / lac learned clip factors and add_diag per-channel diag scales are
# disabled (flat_args.lwc = lac = add_diag = False) and therefore not modeled here.

DIM = 32            # model dim  (Kronecker decomposition 4 x 8)
INTER = 64          # expert intermediate dim (decomposition 8 x 8)
N_ROUTED = 4        # n_routed_experts (experts_start_idx=0, experts_end_idx=N_ROUTED)
N_ACT = 2           # n_activated_experts
N_EXP = N_ROUTED + 1   # routed experts + the shared expert, stacked on one grid axis


def _pick_tile_t(T):
    """Largest multiple-of-8 token tile <= 256 that still leaves >= 2 grid steps when
    possible (so the 'parallel' token axis gives the v7x second TensorCore work)."""
    if T <= 8 or T % 8 != 0:
        return T                       # single block equal to the full token dim
    t = max(8, min(256, (T // 2) // 8 * 8))
    while t > 8 and T % t != 0:
        t -= 8
    return t if T % t == 0 else T


# ---------------------------------------------------------------------------
# In-kernel helpers
# ---------------------------------------------------------------------------
def _act_fake_quant(v, bits):
    """Per-token (per-row) symmetric dynamic fake quantization (ActivationQuantizer).
    Elementwise chain stays f32 (v5e has no bf16 VPU/EUP); the reciprocal goes to the
    otherwise-idle EUP slot."""
    qmax = float(2 ** (bits - 1) - 1)
    s = jnp.max(jnp.abs(v), axis=-1, keepdims=True) * (1.0 / qmax)
    s = jnp.where(s > 0.0, s, 1.0)
    inv_s = pl.reciprocal(s, approx=True)
    return jnp.clip(jnp.round(v * inv_s), -qmax, qmax) * s


# ---------------------------------------------------------------------------
# Kernel 1: fused gate logits + FlatQuant K1 input transform + hoisted act quant
# ---------------------------------------------------------------------------
def gate_trans_kernel(x_ref, w_ref, logits_ref, xtq_ref):
    """y = x @ [gate_w.T | kron(L1,R1)];  logits = y[:, :N_ROUTED];
    xtq = act_fq(y[:, N_ROUTED:])  (per-token quant is identical for every expert, so it is
    computed once here instead of once per expert, and stored bf16 MXU-ready)."""
    y = jnp.dot(x_ref[...], w_ref[...], preferred_element_type=jnp.float32)
    logits_ref[...] = y[:, :N_ROUTED]
    xtq_ref[...] = _act_fake_quant(y[:, N_ROUTED:], A_BITS).astype(xtq_ref.dtype)


def gate_and_transform(x, gate_k1, *, tile_t):
    T, D = x.shape
    Nw = gate_k1.shape[1]
    return pl.pallas_call(
        gate_trans_kernel,
        out_shape=(jax.ShapeDtypeStruct((T, N_ROUTED), jnp.float32),
                   jax.ShapeDtypeStruct((T, D), jnp.bfloat16)),
        grid=(T // tile_t,),
        in_specs=[pl.BlockSpec((tile_t, D), lambda i: (i, 0)),
                  pl.BlockSpec((D, Nw), lambda i: (0, 0))],
        out_specs=(pl.BlockSpec((tile_t, N_ROUTED), lambda i: (i, 0)),
                   pl.BlockSpec((tile_t, D), lambda i: (i, 0))),
        compiler_params=pltpu.CompilerParams(dimension_semantics=("parallel",)),
    )(x, gate_k1)


# ---------------------------------------------------------------------------
# Kernel 2: fused routed + shared experts with in-kernel weighted accumulation
# ---------------------------------------------------------------------------
def moe_experts_kernel(xq_ref, r_ref, w13_ref, k2_ref, w2_ref, o_ref, acc_ref):
    """FlatQuantMoEExpert._trans_forward + MoE combine, one expert per inner grid step:
       gu  = act_fq(x_t) @ [W1'|W3']      (W' = W @ kron(L1,R1), weight-fake-quantized, bf16)
       h   = silu(gu[:, :I]) * gu[:, I:]
       ht  = h @ kron(L2,R2)              (w2_trans on the activation, kept f32)
       out = act_fq(ht) @ W2'
       acc += routing_weight[:, e] * out  (shared-expert column is 1.0)
    """
    e = pl.program_id(1)

    @pl.when(e == 0)
    def _():
        acc_ref[...] = jnp.zeros_like(acc_ref)

    xq = xq_ref[...]                                                      # bf16, pre-quantized
    gu = jnp.dot(xq, w13_ref[...], preferred_element_type=jnp.float32)    # (t, 2*INTER)=128 lanes
    g = gu[:, :INTER]
    u = gu[:, INTER:]
    h = (g * jax.nn.sigmoid(g)) * u
    ht = jnp.dot(h, k2_ref[...], preferred_element_type=jnp.float32)      # full-precision K2
    htq = _act_fake_quant(ht, A_BITS).astype(jnp.bfloat16)
    out = jnp.dot(htq, w2_ref[...], preferred_element_type=jnp.float32)   # (t, DIM)

    # Select this expert's column of the dense routing-weight matrix (tiny VPU select,
    # avoids a dynamic lane slice).
    col = jax.lax.broadcasted_iota(jnp.int32, r_ref.shape, 1)
    w = jnp.sum(jnp.where(col == e, r_ref[...], 0.0), axis=-1, keepdims=True)

    acc_ref[...] += out * w

    @pl.when(e == pl.num_programs(1) - 1)
    def _():
        o_ref[...] = acc_ref[...].astype(o_ref.dtype)


def fused_moe(xq, routing, w13_all, k2_all, w2_all, *, tile_t):
    T, D = xq.shape
    n_exp, _, I2 = w13_all.shape
    I = k2_all.shape[1]
    # TODO(synk): at production dims (DIM~7168, INTER~2048) add INTER/DIM tiling + a K-reduction
    # grid axis and an explicit vmem_limit_bytes, plus MegaBlocks-style token grouping via
    # PrefetchScalarGridSpec instead of dense per-expert compute.
    return pl.pallas_call(
        moe_experts_kernel,
        out_shape=jax.ShapeDtypeStruct((T, D), jnp.float32),
        grid=(T // tile_t, n_exp),
        in_specs=[pl.BlockSpec((tile_t, D), lambda i, e: (i, 0)),
                  pl.BlockSpec((tile_t, n_exp), lambda i, e: (i, 0)),
                  pl.BlockSpec((None, D, I2), lambda i, e: (e, 0, 0)),
                  pl.BlockSpec((None, I, I), lambda i, e: (e, 0, 0)),
                  pl.BlockSpec((None, I, D), lambda i, e: (e, 0, 0))],
        out_specs=pl.BlockSpec((tile_t, D), lambda i, e: (i, 0)),
        scratch_shapes=[pltpu.VMEM((tile_t, D), jnp.float32)],
        compiler_params=pltpu.CompilerParams(
            dimension_semantics=("parallel", "arbitrary")),
    )(xq, routing, w13_all, k2_all, w2_all)


# ---------------------------------------------------------------------------
# Glue: deterministic parameter setup, weight fake-quant, MoE orchestration
# ---------------------------------------------------------------------------
def weight_fake_quant(w, bits):
    """WeightQuantizer: per-out-channel symmetric fake quant (w is [out, in])."""
    qmax = float(2 ** (bits - 1) - 1)
    s = jnp.max(jnp.abs(w), axis=1, keepdims=True) / qmax
    s = jnp.where(s > 0.0, s, 1.0)
    return jnp.clip(jnp.round(w / s), -qmax, qmax) * s


def _orthogonal(key, n):
    q, _ = jnp.linalg.qr(jax.random.normal(key, (n, n), jnp.float32))
    return q


def prep_expert(w1, w2, w3, k_in, k_mid):
    """Fold the FlatQuant transforms into the weights (apply_trans with inv_t=True equals
    W @ kron(L, R) for orthogonal factors), weight fake-quant, transpose to [in, out], and
    concatenate w1/w3 so the kernel does one 128-lane matmul."""
    w1q = weight_fake_quant(w1 @ k_in, W_BITS)     # (INTER, DIM)
    w3q = weight_fake_quant(w3 @ k_in, W_BITS)     # (INTER, DIM)
    w2q = weight_fake_quant(w2 @ k_mid, W_BITS)    # (DIM, INTER)
    w13 = jnp.concatenate([w1q.T, w3q.T], axis=1)  # (DIM, 2*INTER)
    return w13, w2q.T                              # ((DIM, 2I), (INTER, DIM))


def init_params(key):
    keys = jax.random.split(key, 12)
    # Decomposed FlatQuant trans matrices (SVDDecomposeTransMatrix -> orthogonal init).
    L1, R1 = _orthogonal(keys[0], 4), _orthogonal(keys[1], 8)     # get_decompose_dim(DIM)
    L2r, R2r = _orthogonal(keys[2], 8), _orthogonal(keys[3], 8)   # routed w2_trans (INTER)
    L2s, R2s = _orthogonal(keys[4], 8), _orthogonal(keys[5], 8)   # shared w2_trans  (INTER)
    K1 = jnp.kron(L1, R1)            # (DIM, DIM)
    K2_routed = jnp.kron(L2r, R2r)   # (INTER, INTER)
    K2_shared = jnp.kron(L2s, R2s)

    gate_w = 0.1 * jax.random.normal(keys[6], (N_ROUTED, DIM), jnp.float32)

    def make_expert(k):
        k1, k2, k3 = jax.random.split(k, 3)
        w1 = 0.05 * jax.random.normal(k1, (INTER, DIM), jnp.float32)
        w2 = 0.05 * jax.random.normal(k2, (DIM, INTER), jnp.float32)
        w3 = 0.05 * jax.random.normal(k3, (INTER, DIM), jnp.float32)
        return w1, w2, w3

    routed = [prep_expert(*make_expert(keys[7 + i]), K1, K2_routed) for i in range(N_ROUTED)]
    shared = prep_expert(*make_expert(keys[11]), K1, K2_shared)

    # Stacked MXU-ready expert weights (routed experts, then the shared expert last).
    # Quantized weights are stored bf16; K1/K2 transforms stay f32.
    w13_all = jnp.stack([r[0] for r in routed] + [shared[0]]).astype(jnp.bfloat16)
    w2_all = jnp.stack([r[1] for r in routed] + [shared[1]]).astype(jnp.bfloat16)
    k2_all = jnp.stack([K2_routed] * N_ROUTED + [K2_shared])

    # Gate weight and K1 fused into one matmul operand: x @ [gate_w.T | K1].
    gate_k1 = jnp.concatenate([gate_w.T, K1], axis=1)   # (DIM, N_ROUTED + DIM)

    return {"gate_k1": gate_k1, "w13_all": w13_all, "k2_all": k2_all, "w2_all": w2_all}


def flatquant_moe_forward(x, params):
    shape = x.shape
    xt = x.reshape(-1, DIM)
    T = xt.shape[0]
    tile_t = _pick_tile_t(T)

    # Fused gate-logit matmul + K1 transform + per-token act fake-quant (one pallas_call).
    logits, xq = gate_and_transform(xt, params["gate_k1"], tile_t=tile_t)

    # DeepSeek-V3 style routing (softmax score, top-k). Tiny [T, N_ROUTED] work; lax.top_k
    # has no clean Pallas equivalent. Dense routing matrix built with a single one_hot
    # scatter; shared expert gets a constant weight of 1.0 as the last column.
    scores = jax.nn.softmax(logits, axis=-1)
    weights, indices = jax.lax.top_k(scores, N_ACT)
    routing = jnp.sum(jax.nn.one_hot(indices, N_ROUTED, dtype=jnp.float32)
                      * weights[..., None], axis=1)                          # [T, N_ROUTED]
    routing = jnp.concatenate([routing, jnp.ones((T, 1), jnp.float32)], axis=1)

    # Single fused pallas_call over all routed + shared experts with in-kernel weighted
    # accumulation. Dense-compute + zero-weight masking is exactly equivalent to
    # gather-then-compute because the per-token activation quantizer is row-independent.
    # TODO(synk): distributed all_reduce (world_size > 1) not modeled (single device).
    y = fused_moe(xq, routing, params["w13_all"], params["k2_all"], params["w2_all"],
                  tile_t=tile_t)
    return y.reshape(shape)


if __name__ == "__main__":
    key = jax.random.PRNGKey(0)
    kx, kp = jax.random.split(key)
    x = jax.random.normal(kx, (2, 8, DIM), jnp.float32)   # (batch, seq, dim) -> 16 tokens
    params = init_params(kp)
    out = flatquant_moe_forward(x, params)
    jax.block_until_ready(out)
    assert out.shape == x.shape and out.dtype == jnp.float32
    assert bool(jnp.all(jnp.isfinite(out)))
    print("KERNEL_OK")
</pallas_src>

<mosaic_0001>
module attributes {stable_mosaic.version = 11 : i64} {
  func.func @gate_trans_kernel(%arg0: i32, %arg1: memref<8x32xf32, #tpu.memory_space<vmem>>, %arg2: memref<32x36xf32, #tpu.memory_space<vmem>>, %arg3: memref<8x4xf32, #tpu.memory_space<vmem>>, %arg4: memref<8x32xbf16, #tpu.memory_space<vmem>>) attributes {dimension_semantics = [#tpu.dimension_semantics<parallel>], iteration_bounds = array<i64: 2>, scalar_prefetch = 0 : i64, scratch_operands = 0 : i64, tpu.core_type = #tpu.core_type<tc>, window_params = [{transform_indices = @transform_0, window_bounds = array<i64: 8, 32>}, {pipeline_mode = #tpu.pipeline_mode<synchronous>, transform_indices = @transform_1, window_bounds = array<i64: 32, 36>}, {transform_indices = @transform_2, window_bounds = array<i64: 8, 4>}, {transform_indices = @transform_3, window_bounds = array<i64: 8, 32>}]} {
    %c0 = arith.constant 0 : index
    %c0_0 = arith.constant 0 : index
    %0 = vector.load %arg1[%c0, %c0_0] : memref<8x32xf32, #tpu.memory_space<vmem>>, vector<8x32xf32>
    %c0_1 = arith.constant 0 : index
    %c0_2 = arith.constant 0 : index
    %1 = vector.load %arg2[%c0_1, %c0_2] : memref<32x36xf32, #tpu.memory_space<vmem>>, vector<32x36xf32>
    %cst = arith.constant dense<0.000000e+00> : vector<8x36xf32>
    %2 = tpu.matmul %0, %1, %cst {dimension_numbers = #tpu.dot_dimension_numbers<[1], [0], [0], [1], [0, 0, 1, 1], [], []>} : vector<8x32xf32>, vector<32x36xf32>, vector<8x36xf32> -> vector<8x36xf32>
    %3 = vector.extract_strided_slice %2 {offsets = [0, 0], sizes = [8, 4], strides = [1, 1]} : vector<8x36xf32> to vector<8x4xf32>
    %c0_3 = arith.constant 0 : index
    %c0_4 = arith.constant 0 : index
    %4 = vector.load %arg3[%c0_3, %c0_4] : memref<8x4xf32, #tpu.memory_space<vmem>>, vector<8x4xf32>
    tpu.vector_store %arg3[%c0_3, %c0_4], %3 {strides = array<i32>} : memref<8x4xf32, #tpu.memory_space<vmem>>, vector<8x4xf32>,
    %5 = vector.extract_strided_slice %2 {offsets = [0, 4], sizes = [8, 32], strides = [1, 1]} : vector<8x36xf32> to vector<8x32xf32>
    %6 = math.absf %5 : vector<8x32xf32>
    %cst_5 = arith.constant dense<0xFF800000> : vector<8xf32>
    %7 = vector.multi_reduction <maximumf>, %6, %cst_5 [1] : vector<8x32xf32> to vector<8xf32>
    %8 = vector.shape_cast %7 : vector<8xf32> to vector<8x1xf32>
    %cst_6 = arith.constant 0.142857149 : f32
    %9 = vector.broadcast %cst_6 : f32 to vector<8x1xf32>
    %10 = arith.mulf %8, %9 : vector<8x1xf32>
    %cst_7 = arith.constant 0.000000e+00 : f32
    %11 = vector.broadcast %cst_7 : f32 to vector<8x1xf32>
    %12 = arith.cmpf ogt, %10, %11 : vector<8x1xf32>
    %cst_8 = arith.constant 1.000000e+00 : f32
    %13 = vector.broadcast %cst_8 : f32 to vector<8x1xf32>
    %14 = arith.select %12, %10, %13 : vector<8x1xi1>, vector<8x1xf32>
    %15 = tpu.reciprocal %14 {approx = true} : vector<8x1xf32> -> vector<8x1xf32>
    %16 = vector.broadcast %15 : vector<8x1xf32> to vector<8x32xf32>
    %17 = arith.mulf %5, %16 : vector<8x32xf32>
    %18 = math.roundeven %17 : vector<8x32xf32>
    %cst_9 = arith.constant -7.000000e+00 : f32
    %cst_10 = arith.constant 7.000000e+00 : f32
    %19 = vector.broadcast %cst_9 : f32 to vector<8x32xf32>
    %20 = arith.maximumf %19, %18 : vector<8x32xf32>
    %21 = vector.broadcast %cst_10 : f32 to vector<8x32xf32>
    %22 = arith.minimumf %21, %20 : vector<8x32xf32>
    %23 = vector.broadcast %14 : vector<8x1xf32> to vector<8x32xf32>
    %24 = arith.mulf %22, %23 : vector<8x32xf32>
    %25 = arith.truncf %24 : vector<8x32xf32> to vector<8x32xbf16>
    %c0_11 = arith.constant 0 : index
    %c0_12 = arith.constant 0 : index
    %26 = vector.load %arg4[%c0_11, %c0_12] : memref<8x32xbf16, #tpu.memory_space<vmem>>, vector<8x32xbf16>
    tpu.vector_store %arg4[%c0_11, %c0_12], %25 {strides = array<i32>} : memref<8x32xbf16, #tpu.memory_space<vmem>>, vector<8x32xbf16>,
    return
  }
  func.func @transform_0(%arg0: i32) -> (i32, i32) {
    %c0_i32 = arith.constant 0 : i32
    %c0_i32_0 = arith.constant 0 : i32
    return %arg0, %c0_i32 : i32, i32
  }
  func.func @transform_1(%arg0: i32) -> (i32, i32) {
    %c0_i32 = arith.constant 0 : i32
    %c0_i32_0 = arith.constant 0 : i32
    %c0_i32_1 = arith.constant 0 : i32
    return %c0_i32, %c0_i32_0 : i32, i32
  }
  func.func @transform_2(%arg0: i32) -> (i32, i32) {
    %c0_i32 = arith.constant 0 : i32
    %c0_i32_0 = arith.constant 0 : i32
    return %arg0, %c0_i32 : i32, i32
  }
  func.func @transform_3(%arg0: i32) -> (i32, i32) {
    %c0_i32 = arith.constant 0 : i32
    %c0_i32_0 = arith.constant 0 : i32
    return %arg0, %c0_i32 : i32, i32
  }
}

</mosaic_0001>

<bundles_post_ra>
// kernel: tpu_custom_call.1
= control target key start
LH: loop header
LB: loop body
LE: loop exit
PB: predicated region body
PF: predicated region fallthrough
CT: control target
= control target key end

     0   :  { %9 = vsyncpa [#allocation3], 0  ;;  %s909_s0 = inlined_call_operand.hbm [shape: f32[16,32], index: 0, kind: input, shape index: {}]   ;;  %s910_s1 = inlined_call_operand.hbm [shape: f32[32,36], index: 1, kind: input, shape index: {}]   ;;  %s911_s2 = inlined_call_operand.vmem [shape: f32[16,4], index: 2, kind: output, shape index: {0}]   ;;  %s912_s3 = inlined_call_operand.hbm [shape: bf16[16,32], index: 3, kind: output, shape index: {1}]  }
   0x1   :  { %11 = vsyncpa [#allocation3 + $0x1], 0 }
   0x2   :  { %12 = vsyncpa [#allocation6], 0 }
   0x3   :  { %13 = vsyncpa [#allocation4], 0 }
   0x4   :  { %15 = vsyncpa [#allocation4 + $0x1], 0  ;;  %s707_s12 = smov 0   ;;  %s709_s13 = smov 0  }
   0x5   :  { %s711_s14 = smov 0   ;;  %s713_s15 = smov 0  }
   0x6 LB: > { %s728_s16 = sadd.s32 4294967295, %s676_s15   ;;  %s441_s17 = sadd.s32 4294967294, %s676_s15   ;;  %s676_s15 = sphi %s713_s15, %s932_s15   ;;  %s672_s14 = sphi %s711_s14, %s931_s14   ;;  %s668_s13 = sphi %s709_s13, %s930_s13   ;;  %s664_s12 = sphi %s707_s12, %s929_s12  }
   0x7   : > { %p41_p0 = scmp.ne.s32.totalorder %s668_s13, %s664_s12  ;;  %p913_p1 = scmp.eq.s32.totalorder %s728_s16, 0 }
   0x8   : > { %p118_p3 = scmp.eq.s32.totalorder %s441_s17, 1  ;;  %p442_p5 = scmp.ge.s32.totalorder %s676_s15, 1 }
   0x9   : > { %p737_p4 = por %p913_p1, %p41_p0  ;;  %p125_p7 = scmp.lt.s32.totalorder %s676_s15, 3 }
   0xa   : > { %p742_p6 = por %p118_p3, %p41_p0  ;;  %s678_s21 = smov [#allocation5]  }
   0xb   : > { %s916_s18 = scalar_select %p737_p4, 1, 0 }
   0xc   : > { %s917_s19 = scalar_select %p742_p6, 1, 0 }
   0xd   : > { %p747_p8 = pnand %p442_p5, %p125_p7  ;;  %s137_s22 = sshll.u32 %s678_s21, 4  ;;  %s751_s22 = int_to_ptr.vmem [resolvable:$true] %s137_s22 }
   0xe   : > { %s763_s24 = sadd.s32 1, %s676_s15   ;;  %s28_s25 = sadd.s32 1, %s672_s14 }
   0xf   : > { %s918_s20 = scalar_select %p747_p8, 1, 0 }
  0x10   : > { %p491_p9 = pneg %p747_p8  ;;  %s25_s26 = ssub.s32 %s676_s15, %s763_s24 }
  0x11   : > { %s548_s29 = scalar_lea.hbm %s910_s1, 512 }
  0x12   : > { %p758_p11 = pnand %p491_p9, %p913_p1  ;;  %p549_p12 = scmp.ne.s32.totalorder %s910_s1, %s548_s29 }
  0x13   : > { %p555_p5 = scmp.lt.u32.totalorder %s548_s29, %s910_s1 }
  0x14   : > { %p550_p13 = pneg %p758_p11 }
  0x16   : > { %p551_p0 = pnand %p550_p13, %p549_p12 }
  0x18   : > { %p552_p3 = pneg %p551_p0 }
  0x1a   : > { %p557_p7 = pnand %p555_p5, %p552_p3 }
  0x1c   : > { %560 = shalt.err (!%p557_p7)
}
  0x1d   : > { %s561_s7 = scalar_lea.vmem %s751_s22, 512  ;;  %p569_p2 = scmp.lt.s32.totalorder %s751_s22, %s751_s22 }
  0x1e   : > { %p562_p9 = scmp.ne.s32.totalorder %s751_s22, %s561_s7  ;;  %p570_p6 = scmp.lt.s32.totalorder %s561_s7, %s561_s7 }
  0x20   : > { %p564_p10 = pnand %p562_p9, %p550_p13  ;;  %p571_p4 = por %p570_p6, %p569_p2 }
  0x22   : > { %p565_p1 = pneg %p564_p10 }
  0x24   : > { %p572_p8 = pnand %p571_p4, %p565_p1 }
  0x26   : > { %575 = shalt.err (!%p572_p8)
}
  0x27   : > { %s679_s8 = smov 128   ;;  %s680_s9 = smov 8  }
  0x28   : > { %494 = dma.hbm_to_vmem [thread:$0]  (!%p758_p11), %s910_s1, 512, %s751_s22, [#allocation6], %s679_s8, %s679_s8, %s680_s9  }
  0x29   : > { %p26_p2 = scmp.eq.s32.totalorder %s25_s26, 0  ;;  %p35_p1 = scmp.ne.s32.totalorder %s672_s14, %s668_s13 }
  0x2a   : > { %p36_p4 = scmp.eq.s32.totalorder %s676_s15, 0  ;;  %p504_p6 = scmp.lt.s32.totalorder %s676_s15, 2 }
  0x2b   : > { %s794_s17 = scalar_select %p26_p2, %s672_s14, %s28_s25  }
  0x2c   : > { %p37_p8 = por %p36_p4, %p35_p1  ;;  %p920_p10 = scmp.eq.s32.totalorder %s728_s16, 1 }
  0x2d   : > { %s151_s27 = sand.u32 1, %s672_s14   ;;  %s446_s28 = sshll.u32 %s676_s15, 7 }
  0x2e   : > { %p798_p12 = por %p920_p10, %p35_p1  ;;  %s445_s29 = sshll.u32 %s151_s27, 3 }
  0x2f   : > { %s807_s4 = scalar_lea.hbm %s909_s0, %s446_s28  ;;  %s155_s22 = scalar_lea.vmem [#allocation2], %s445_s29 }
  0x30   : > { %s162_s25 = sshll.u32 %s155_s22, 4  ;;  %p809_p11 = pnand %p504_p6, %p37_p8  ;;  %s813_s25 = int_to_ptr.vmem [resolvable:$true] %s162_s25 }
  0x31   : > { %s152_s5 = scalar_lea.sflag [#allocation3], %s151_s27  ;;  %s576_s6 = scalar_lea.hbm %s807_s4, 128 }
  0x32   : > { %p577_p13 = scmp.ne.s32.totalorder %s807_s4, %s576_s6  ;;  %p578_p0 = pneg %p809_p11 }
  0x33   : > { %s581_s9 = scalar_lea.hbm %s909_s0, 256  ;;  %p582_p7 = scmp.lt.u32.totalorder %s807_s4, %s909_s0 }
  0x34   : > { %p579_p3 = pnand %p578_p0, %p577_p13  ;;  %p583_p9 = scmp.lt.u32.totalorder %s581_s9, %s576_s6 }
  0x35   : > { %p585_p1 = scmp.lt.u32.totalorder %s576_s6, %s807_s4 }
  0x36   : > { %p580_p5 = pneg %p579_p3  ;;  %p584_p2 = por %p583_p9, %p582_p7 }
  0x38   : > { %p586_p4 = por %p585_p1, %p584_p2 }
  0x3a   : > { %p587_p6 = pnand %p586_p4, %p580_p5 }
  0x3c   : > { %590 = shalt.err (!%p587_p6)
}
  0x3d   : > { %s591_s27 = scalar_lea.vmem %s813_s25, 128  ;;  %s681_s28 = smov [#allocation2]  }
  0x3e   : > { %p592_p8 = scmp.ne.s32.totalorder %s813_s25, %s591_s27  ;;  %s596_s29 = sshll.u32 %s681_s28, 4  ;;  %s597_s29 = int_to_ptr.vmem [resolvable:$false] %s596_s29 }
  0x3f   : > { %s598_s23 = scalar_lea.vmem %s597_s29, 256  ;;  %p599_p3 = scmp.lt.s32.totalorder %s813_s25, %s597_s29 }
  0x40   : > { %p594_p10 = pnand %p592_p8, %p578_p0  ;;  %p600_p7 = scmp.lt.s32.totalorder %s598_s23, %s591_s27 }
  0x42   : > { %p595_p13 = pneg %p594_p10  ;;  %p601_p9 = por %p600_p7, %p599_p3 }
  0x44   : > { %p602_p2 = pnand %p601_p9, %p595_p13 }
  0x46   : > { %605 = shalt.err (!%p602_p2)
}
  0x47   : > { %498 = dma.hbm_to_vmem [thread:$0]  (!%p809_p11), %s807_s4, 128, %s813_s25, %s152_s5  }
  0x48   : > { %p923_p5 = scmp.ne.s32.totalorder %s918_s20, 0 }
  0x49   : > { %s843_s30 = sand.u32 (!%p923_p5), 1, %s668_s13   ;;  %p924_p0 = scmp.ne.s32.totalorder (!%p923_p5), %s916_s18, 0 }
  0x4a   : > { %171 = sbr.rel (%p923_p5) target bundleno = 606 (0x25e), region = 28  ;;  %s448_s22 = sshll.u32 (!%p923_p5), %s843_s30, 3 }
  0x4b   : > { %s174_s6 = scalar_lea.sflag (!%p923_p5), [#allocation3], %s843_s30  ;;  %s177_s7 = scalar_lea.vmem (!%p923_p5), [#allocation2], %s448_s22 }
  0x51   : > { %651 = dma.done.wait (%p924_p0), %s174_s6, 128  }
  0x52   : > { %653 = vsyncadd (%p924_p0), %s174_s6, 4294967168  ;;  %p925_p1 = scmp.eq.s32.totalorder %s728_s16, 0 }
  0x54   : > { %655 = dma.done.wait (%p925_p1), [#allocation6], 512   ;;  %p926_p11 = pmov %p925_p1 }
  0x55   : > { %v682_v0 = vmov 0.0|0.0   ;;  %vm683_vm0 = vmmov 0   ;;  %v684_v1 = vmov 0.0   ;;  %v213_v2 = vld [vmem:[#allocation5] sm:$0xff]  ;;  %v214_v3 = vld [vmem:[#allocation5 + $0x8] sm:$0xff]  ;;  %v215_v4 = vld [vmem:[#allocation5 + $0x10] sm:$0xff] }
  0x56   : > { %657 = vsyncadd (%p926_p11), [#allocation6], 4294966784  ;;  %476 = vmatprep.subr.bf16.mxu0 %v682_v0  ;;  %473 = vmatprep.mubr.msk.f32.mxu0 %vm683_vm0, %v684_v1  ;;  %v477_v5 = vpack.c.bf16 %v214_v3, %v213_v2  ;;  %v216_v6 = vld [vmem:[#allocation5 + $0x18] sm:$0xff]  ;;  %vm217_vm1 = vcmask 261120   ;;  %p208_p4 = scmp.lt.s32.totalorder %s728_s16, 1  ;;  %vm291_vm2 = vcmask 31744  }
  0x57   : > { %v480_v7 = vpack.c.bf16 %v216_v6, %v215_v4  ;;  %v212_v8 = vld [vmem:[%s177_s7] sm:$0xff]  ;;  %vm294_vm3 = vcmask 293920   ;;  %s685_s5 = smov 124   ;;  %s450_s8 = sshll.u32 %s843_s30, 2  ;;  %vm314_vm5 = vcmask 257024  }
  0x58   : > { %478 = vmatpush3.bf16.msra.mxu0 %v477_v5  ;;  %s209_s18 = scalar_select %p208_p4, %s728_s16, 1 }
  0x59   : > { %479 = vmatprep.subr.bf16.mxu0 %v682_v0  ;;  %s456_s9 = sshll.u32 %s728_s16, 6  ;;  %s207_s10 = scalar_lea.vmem [#allocation7], %s450_s8 }
  0x5a   : > { %s451_s20 = sshll.u32 %s209_s18, 3  ;;  %s337_s11 = sshll.u32 %s207_s10, 4  ;;  %s867_s11 = int_to_ptr.vmem [resolvable:$true] %s337_s11 }
  0x5b   : > { %s211_s26 = scalar_lea.vmem %s911_s2, %s451_s20  ;;  %s865_s29 = scalar_lea.hbm %s912_s3, %s456_s9 }
  0x5c   : > { %481 = vmatpush3.bf16.msra.mxu0 %v480_v7  ;;  %s321_s23 = scalar_lea.sflag [#allocation4], %s843_s30  ;;  %s606_s22 = scalar_lea.vmem %s867_s11, 64 }
  0x5d   : > { %p607_p6 = scmp.ne.s32.totalorder %s867_s11, %s606_s22  ;;  %s686_s16 = smov [#allocation7]  }
  0x5e   : > { %s610_s6 = sshll.u32 %s686_s16, 4  ;;  %s611_s6 = int_to_ptr.vmem [resolvable:$false] %s610_s6 }
  0x5f   : > { %474 = vmatmul.mubr.msk.f32.vlgmr.msra.gmra.mrb[0].mxu0 %vm217_vm1, %v212_v8  ;;  %p608_p8 = pnand %p607_p6, %p798_p12  ;;  %s612_s7 = scalar_lea.vmem %s611_s6, 128 }
  0x60   : > { %p613_p13 = scmp.lt.s32.totalorder %s867_s11, %s611_s6  ;;  %p614_p3 = scmp.lt.s32.totalorder %s612_s7, %s606_s22 }
  0x61   : > { %p609_p10 = pneg %p608_p8 }
  0x62   : > { %p615_p7 = por %p614_p3, %p613_p13 }
  0x64   : > { %p616_p9 = pnand %p615_p7, %p609_p10 }
 0x132   : > { %v287_v9 = vpop.f32.mrb[0].mxu0 }
 0x133   : > { %292 = vst.msk [vmem:[%s211_s26] sm:$0xff] %vm291_vm2, %v287_v9  ;;  %v475_v10 = vpop.f32.mrb[1].mxu0  ;;  %v293_v11 = vand.u32 2147483647, %v287_v9 }
 0x135   : > { %v295_v12 = vsel %vm294_vm3, %v293_v11, -inf }
 0x136   : > { %296 = vmax.xlane.f32.xlu0 %v295_v12 }
 0x1c3   : > { %v297_v13 = vpop.xlane.xlu0 %296 }
 0x1c4   : > { %v298_v14 = vmul.f32 0.14285715, %v297_v13 }
 0x1c6   : > { %vm299_vm4 = vcmp.gt.f32.partialorder %v298_v14, 0.0 }
 0x1c7   : > { %v300_v15 = vsel %vm299_vm4, %v298_v14, 1.0 }
 0x1c8   : > { %546 = vrcp.f32 %v300_v15 }
 0x1d2   : > { %v547_v16 = vpop.eup %546 }
 0x1d3   : > { %v302_v17 = vmul.f32 %v547_v16, %v287_v9 }
 0x1d5   : > { %v482_v18 = vround.rtne.f32 %v302_v17 }
 0x1d7   : > { %v453_v19 = vclamps-f32 %v482_v18, 7.0 }
 0x1d9   : > { %v306_v20 = vmul.f32 %v453_v19, %v300_v15 }
 0x1db   : > { %v459_v21 = vpack.c.bf16 %v306_v20, %v306_v20 }
 0x1dd   : > { %311 = vrot.lane.b32.xlu0 %v459_v21, %s685_s5 }
 0x24f   : > { %v312_v22 = vpop.permute.xlu0 %311 }
 0x250   : > { %315 = vst.msk [vmem:[%s207_s10] sm:$0xf] %vm314_vm5, %v312_v22 }
 0x251   : > { %619 = shalt.err (!%p616_p9)
}
 0x252   : > { %s620_s30 = scalar_lea.hbm %s865_s29, 64  ;;  %s624_s4 = scalar_lea.hbm %s912_s3, 128 }
 0x253   : > { %p621_p2 = scmp.ne.s32.totalorder %s865_s29, %s620_s30  ;;  %p625_p1 = scmp.lt.u32.totalorder %s865_s29, %s912_s3 }
 0x254   : > { %p626_p11 = scmp.lt.u32.totalorder %s624_s4, %s620_s30  ;;  %p628_p6 = scmp.lt.u32.totalorder %s620_s30, %s865_s29 }
 0x255   : > { %p622_p5 = pnand %p621_p2, %p798_p12 }
 0x256   : > { %p627_p4 = por %p626_p11, %p625_p1 }
 0x257   : > { %p623_p0 = pneg %p622_p5 }
 0x258   : > { %p629_p8 = por %p628_p6, %p627_p4 }
 0x25a   : > { %p630_p10 = pnand %p629_p8, %p623_p0 }
 0x25c   : > { %633 = shalt.err (!%p630_p10)
}
 0x25d   : > { %489 = dma.vmem_to_hbm [thread:$0]  (%p798_p12), %s867_s11, 64, %s865_s29, %s321_s23  }
 0x25e PF: > { %s356_s5 = sand.u32 1, %s664_s12   ;;  %p927_p13 = scmp.ne.s32.totalorder %s917_s19, 0 }
 0x25f   : > { %p928_p3 = scmp.ge.s32.totalorder %s676_s15, 2  ;;  %s357_s8 = scalar_lea.sflag [#allocation4], %s356_s5 }
 0x261   : > { %p500_p7 = pnand %p928_p3, %p927_p13 }
 0x263   : > { %659 = dma.done.wait (!%p500_p7), %s357_s8, 64  }
 0x264   : > { %661 = vsyncadd (!%p500_p7), %s357_s8, 4294967232  ;;  %p18_p9 = scmp.ge.s32.totalorder %s763_s24, 4   ;;  %s929_s12 = smov %s668_s13 }
 0x265   : > { %s930_s13 = smov %s672_s14  ;;  %s931_s14 = smov %s794_s17 }
 0x266   : > { %s932_s15 = smov %s763_s24  ;;  %20 = sbr.rel (!%p18_p9) target bundleno = 6 (0x6), region = 89 }
 0x26d   :  { %362 = vsyncpa [#allocation3], 1 }
 0x26e   :  { %364 = vsyncpa [#allocation3 + $0x1], 1 }
 0x26f   :  { %365 = vsyncpa [#allocation6], 1 }
 0x270   :  { %366 = vsyncpa [#allocation4], 1 }
 0x271   :  { %368 = vsyncpa [#allocation4 + $0x1], 1 }

</bundles_post_ra>
